<compile_context>
chip_gen: v7x
topology: tpu7x:2x2x1
jax: 0.10.0
libtpu: 0.0.40
codegen_flags: <defaults>
</compile_context>

<pallas_src>
import functools

import jax
import jax.numpy as jnp
from jax import lax
from jax.experimental import pallas as pl
from jax.experimental.pallas import tpu as pltpu


def _packed_gram_kernel(x_ref, o_ref, *, n_cls):
    """One grid step: (TB, n_cls, C) -> packed strict-upper-triangle (TB, 1, P).

    o_ref[b, 0, :] = 1 + [g[b, i, j] for i in range(n_cls) for j in range(i+1, n_cls)]
    (row-major order, identical to torch.masked_select of triu(1)).
    """
    x = x_ref[...]
    # Batched gram: contract last dims of both operands, batch over dim 0.
    # No explicit .T -> no XLU relayout before the MXU; f32 accumulation.
    g = lax.dot_general(
        x, x,
        dimension_numbers=(((2,), (2,)), ((0,), (0,))),
        preferred_element_type=jnp.float32,
    )  # (TB, n_cls, n_cls)
    g = g + 1.0
    # Pack the strict upper triangle while it is still in VMEM: the symmetric
    # gram never touches HBM and no XLA gather is needed afterwards.  All
    # offsets/lengths are static, so these lower to static (masked) stores.
    # TODO(synk): for very large n_cls, tile the gram 2-D over (i_blk, j_blk)
    # and skip j_blk < i_blk tiles to also halve MXU flops (kernel is
    # mem-bound at typical sizes, so not done here).
    off = 0
    for i in range(n_cls - 1):
        length = n_cls - 1 - i
        o_ref[:, :, off:off + length] = (
            g[:, i:i + 1, i + 1:i + 1 + length].astype(o_ref.dtype))
        off += length


def _vmem_config():
    """Returns (vmem_limit_bytes, block_budget_bytes) from the chip VMEM size."""
    cap = None
    try:
        info = pltpu.get_tpu_info()
        cap = int(getattr(info, "vmem_capacity_bytes", 0)) or None
    except Exception:
        cap = None
    if cap is None or cap < (16 << 20):
        cap = 64 << 20  # conservative fallback = v7x physical VMEM per core
    vmem_limit = min((cap * 3) // 4, 100 << 20)  # ~48 MiB v7x, ~96 MiB v5e/v6e
    return vmem_limit, vmem_limit // 2


def _pick_tb(N, n_cls, C, in_itemsize, out_itemsize, budget_bytes):
    """Batch-tile size: fits the VMEM budget, keeps >=4 grid steps when possible."""
    P = max(n_cls * (n_cls - 1) // 2, 1)
    per_batch = (2 * n_cls * C * in_itemsize     # double-buffered input block
                 + 2 * P * out_itemsize          # double-buffered packed output
                 + n_cls * n_cls * 4)            # f32 gram intermediate
    tb = max(1, budget_bytes // per_batch)
    tb = min(tb, N)
    if N >= 8:
        # Keep >= 4 pipeline steps: DMA/compute overlap + v7x megacore sharding.
        tb = min(tb, max(1, pl.cdiv(N, 4)))
    return max(int(tb), 1)


def cls_emb_loss_pallas(cls_emb: jnp.ndarray) -> jnp.ndarray:
    """Pallas implementation of cls_emb_loss.forward (dist='cos').

    Args:
      cls_emb: (N, N_cls, C) array (rows assumed normalized).
    Returns:
      loss: (N, N_cls*(N_cls-1)//2) array, same dtype as cls_emb.
    """
    N, N_cls, C = cls_emb.shape
    P = N_cls * (N_cls - 1) // 2
    out_dtype = cls_emb.dtype
    if P == 0:
        return jnp.zeros((N, 0), dtype=out_dtype)

    in_itemsize = jnp.dtype(cls_emb.dtype).itemsize
    out_itemsize = jnp.dtype(out_dtype).itemsize
    vmem_limit, budget = _vmem_config()
    TB = _pick_tb(N, N_cls, C, in_itemsize, out_itemsize, budget)
    steps = pl.cdiv(N, TB)

    cost = pl.CostEstimate(
        flops=2 * N * N_cls * N_cls * C,
        transcendentals=0,
        bytes_accessed=N * N_cls * C * in_itemsize + N * P * out_itemsize,
    )

    packed = pl.pallas_call(
        functools.partial(_packed_gram_kernel, n_cls=N_cls),
        out_shape=jax.ShapeDtypeStruct((N, 1, P), out_dtype),
        grid_spec=pltpu.PrefetchScalarGridSpec(
            num_scalar_prefetch=0,
            grid=(steps,),
            in_specs=[pl.BlockSpec((TB, N_cls, C), lambda b: (b, 0, 0))],
            out_specs=pl.BlockSpec((TB, 1, P), lambda b: (b, 0, 0)),
        ),
        compiler_params=pltpu.CompilerParams(
            dimension_semantics=("parallel",),
            vmem_limit_bytes=vmem_limit,
        ),
        cost_estimate=cost,
    )(cls_emb)

    # Unit-dim removal only (layout-compatible reshape); no gather, no
    # full-gram HBM round trip.
    return packed.reshape(N, P)


def cls_emb_loss_ref(cls_emb: jnp.ndarray) -> jnp.ndarray:
    """Pure-JAX reference (mirrors the PyTorch forward)."""
    x = cls_emb.astype(jnp.float32)
    dist = jnp.einsum("bic,bjc->bij", x, x)
    iu, ju = jnp.triu_indices(cls_emb.shape[1], k=1)
    return (1.0 + dist[:, iu, ju]).astype(cls_emb.dtype)


if __name__ == "__main__":
    # Small shapes consistent with (b, n_cls, c)
    N, N_cls, C = 2, 8, 32
    key = jax.random.PRNGKey(0)
    x = jax.random.uniform(key, (N, N_cls, C), dtype=jnp.float32)  # values in [0, 1]
    x = x / jnp.linalg.norm(x, axis=-1, keepdims=True)  # normalized rows

    loss_fn = jax.jit(cls_emb_loss_pallas)
    out = jax.block_until_ready(loss_fn(x))
    ref = jax.block_until_ready(cls_emb_loss_ref(x))

    assert out.shape == (N, N_cls * (N_cls - 1) // 2), out.shape
    assert jnp.allclose(out, ref, atol=1e-5, rtol=1e-5), (out, ref)
    print("KERNEL_OK")
</pallas_src>

<mosaic_0001>
module attributes {stable_mosaic.version = 11 : i64} {
  func.func @_packed_gram_kernel(%arg0: i32, %arg1: memref<2x8x32xf32, #tpu.memory_space<vmem>>, %arg2: memref<2x1x28xf32, #tpu.memory_space<vmem>>) attributes {dimension_semantics = [#tpu.dimension_semantics<parallel>], iteration_bounds = array<i64: 1>, scalar_prefetch = 0 : i64, scratch_operands = 0 : i64, tpu.core_type = #tpu.core_type<tc>, window_params = [{transform_indices = @transform_0, window_bounds = array<i64: 2, 8, 32>}, {transform_indices = @transform_1, window_bounds = array<i64: 2, 1, 28>}]} {
    %c0 = arith.constant 0 : index
    %c0_0 = arith.constant 0 : index
    %c0_1 = arith.constant 0 : index
    %0 = vector.load %arg1[%c0, %c0_0, %c0_1] : memref<2x8x32xf32, #tpu.memory_space<vmem>>, vector<2x8x32xf32>
    %cst = arith.constant dense<0.000000e+00> : vector<2x8x8xf32>
    %1 = tpu.matmul %0, %0, %cst {dimension_numbers = #tpu.dot_dimension_numbers<[2], [2], [1], [1], [0, 0, 0, 1, 1, 1], [0], [0]>} : vector<2x8x32xf32>, vector<2x8x32xf32>, vector<2x8x8xf32> -> vector<2x8x8xf32>
    %cst_2 = arith.constant 1.000000e+00 : f32
    %2 = vector.broadcast %cst_2 : f32 to vector<2x8x8xf32>
    %3 = arith.addf %1, %2 : vector<2x8x8xf32>
    %4 = vector.extract_strided_slice %3 {offsets = [0, 0, 1], sizes = [2, 1, 7], strides = [1, 1, 1]} : vector<2x8x8xf32> to vector<2x1x7xf32>
    %c0_3 = arith.constant 0 : index
    %c0_4 = arith.constant 0 : index
    %c0_5 = arith.constant 0 : index
    %5 = vector.load %arg2[%c0_3, %c0_4, %c0_5] : memref<2x1x28xf32, #tpu.memory_space<vmem>>, vector<2x1x7xf32>
    tpu.vector_store %arg2[%c0_3, %c0_4, %c0_5], %4 {strides = array<i32>} : memref<2x1x28xf32, #tpu.memory_space<vmem>>, vector<2x1x7xf32>,
    %6 = vector.extract_strided_slice %3 {offsets = [0, 1, 2], sizes = [2, 1, 6], strides = [1, 1, 1]} : vector<2x8x8xf32> to vector<2x1x6xf32>
    %c0_6 = arith.constant 0 : index
    %c0_7 = arith.constant 0 : index
    %c7 = arith.constant 7 : index
    %7 = vector.load %arg2[%c0_6, %c0_7, %c7] : memref<2x1x28xf32, #tpu.memory_space<vmem>>, vector<2x1x6xf32>
    tpu.vector_store %arg2[%c0_6, %c0_7, %c7], %6 {strides = array<i32>} : memref<2x1x28xf32, #tpu.memory_space<vmem>>, vector<2x1x6xf32>,
    %8 = vector.extract_strided_slice %3 {offsets = [0, 2, 3], sizes = [2, 1, 5], strides = [1, 1, 1]} : vector<2x8x8xf32> to vector<2x1x5xf32>
    %c0_8 = arith.constant 0 : index
    %c0_9 = arith.constant 0 : index
    %c13 = arith.constant 13 : index
    %9 = vector.load %arg2[%c0_8, %c0_9, %c13] : memref<2x1x28xf32, #tpu.memory_space<vmem>>, vector<2x1x5xf32>
    tpu.vector_store %arg2[%c0_8, %c0_9, %c13], %8 {strides = array<i32>} : memref<2x1x28xf32, #tpu.memory_space<vmem>>, vector<2x1x5xf32>,
    %10 = vector.extract_strided_slice %3 {offsets = [0, 3, 4], sizes = [2, 1, 4], strides = [1, 1, 1]} : vector<2x8x8xf32> to vector<2x1x4xf32>
    %c0_10 = arith.constant 0 : index
    %c0_11 = arith.constant 0 : index
    %c18 = arith.constant 18 : index
    %11 = vector.load %arg2[%c0_10, %c0_11, %c18] : memref<2x1x28xf32, #tpu.memory_space<vmem>>, vector<2x1x4xf32>
    tpu.vector_store %arg2[%c0_10, %c0_11, %c18], %10 {strides = array<i32>} : memref<2x1x28xf32, #tpu.memory_space<vmem>>, vector<2x1x4xf32>,
    %12 = vector.extract_strided_slice %3 {offsets = [0, 4, 5], sizes = [2, 1, 3], strides = [1, 1, 1]} : vector<2x8x8xf32> to vector<2x1x3xf32>
    %c0_12 = arith.constant 0 : index
    %c0_13 = arith.constant 0 : index
    %c22 = arith.constant 22 : index
    %13 = vector.load %arg2[%c0_12, %c0_13, %c22] : memref<2x1x28xf32, #tpu.memory_space<vmem>>, vector<2x1x3xf32>
    tpu.vector_store %arg2[%c0_12, %c0_13, %c22], %12 {strides = array<i32>} : memref<2x1x28xf32, #tpu.memory_space<vmem>>, vector<2x1x3xf32>,
    %14 = vector.extract_strided_slice %3 {offsets = [0, 5, 6], sizes = [2, 1, 2], strides = [1, 1, 1]} : vector<2x8x8xf32> to vector<2x1x2xf32>
    %c0_14 = arith.constant 0 : index
    %c0_15 = arith.constant 0 : index
    %c25 = arith.constant 25 : index
    %15 = vector.load %arg2[%c0_14, %c0_15, %c25] : memref<2x1x28xf32, #tpu.memory_space<vmem>>, vector<2x1x2xf32>
    tpu.vector_store %arg2[%c0_14, %c0_15, %c25], %14 {strides = array<i32>} : memref<2x1x28xf32, #tpu.memory_space<vmem>>, vector<2x1x2xf32>,
    %16 = vector.extract_strided_slice %3 {offsets = [0, 6, 7], sizes = [2, 1, 1], strides = [1, 1, 1]} : vector<2x8x8xf32> to vector<2x1x1xf32>
    %c0_16 = arith.constant 0 : index
    %c0_17 = arith.constant 0 : index
    %c27 = arith.constant 27 : index
    %17 = vector.load %arg2[%c0_16, %c0_17, %c27] : memref<2x1x28xf32, #tpu.memory_space<vmem>>, vector<2x1x1xf32>
    tpu.vector_store %arg2[%c0_16, %c0_17, %c27], %16 {strides = array<i32>} : memref<2x1x28xf32, #tpu.memory_space<vmem>>, vector<2x1x1xf32>,
    return
  }
  func.func @transform_0(%arg0: i32) -> (i32, i32, i32) {
    %c0_i32 = arith.constant 0 : i32
    %c0_i32_0 = arith.constant 0 : i32
    %c0_i32_1 = arith.constant 0 : i32
    return %arg0, %c0_i32, %c0_i32_0 : i32, i32, i32
  }
  func.func @transform_1(%arg0: i32) -> (i32, i32, i32) {
    %c0_i32 = arith.constant 0 : i32
    %c0_i32_0 = arith.constant 0 : i32
    %c0_i32_1 = arith.constant 0 : i32
    return %arg0, %c0_i32, %c0_i32_0 : i32, i32, i32
  }
}

</mosaic_0001>

<bundles_post_ra>
// kernel: cls_emb_loss_pallas.1
= control target key start
LH: loop header
LB: loop body
LE: loop exit
PB: predicated region body
PF: predicated region fallthrough
CT: control target
= control target key end

     0   :  { %6 = vsyncpa [#allocation3], 0  ;;  %s384_s0 = inlined_call_operand.hbm [shape: f32[2,8,32], index: 0, kind: input, shape index: {}]   ;;  %s385_s1 = inlined_call_operand.hbm [shape: f32[2,1,28], index: 1, kind: output, shape index: {}]  }
   0x1   :  { %7 = vsyncpa [#allocation4], 0  ;;  %s335_s6 = smov [#allocation2]   ;;  %s287_s10 = scalar_lea.hbm %s384_s0, 256 }
   0x2   :  { %s13_s7 = sshll.u32 %s335_s6, 4  ;;  %p288_p0 = scmp.ne.s32.totalorder %s384_s0, %s287_s10  ;;  %s14_s7 = int_to_ptr.vmem [resolvable:$true] %s13_s7 }
   0x3   :  { %p291_p1 = scmp.lt.u32.totalorder %s287_s10, %s384_s0 }
   0x5   :  { %p293_p2 = pnand %p291_p1, %p288_p0 }
   0x7   :  { %296 = shalt.err (!%p293_p2)
}
   0x8   :  { %s297_s15 = scalar_lea.vmem %s14_s7, 256  ;;  %p302_p4 = scmp.lt.s32.totalorder %s14_s7, %s14_s7 }
   0x9   :  { %p298_p3 = scmp.ne.s32.totalorder %s14_s7, %s297_s15  ;;  %p303_p5 = scmp.lt.s32.totalorder %s297_s15, %s297_s15 }
   0xb   :  { %p304_p6 = por %p303_p5, %p302_p4 }
   0xd   :  { %p305_p7 = pnand %p304_p6, %p298_p3 }
   0xf   :  { %308 = shalt.err (!%p305_p7)
}
  0x10   :  { %s336_s16 = smov 128   ;;  %s337_s17 = smov 8  }
  0x11   :  { %19 = dma.hbm_to_vmem [thread:$0]  %s384_s0, 256, %s14_s7, [#allocation3], %s336_s16, %s336_s16, %s337_s17  }
  0x12   :  { %331 = dma.done.wait [#allocation3], 256  }
  0x13   :  { %332 = vsyncadd [#allocation3], 4294967040  ;;  %v338_v0 = vmov 0.0   ;;  %vm339_vm0 = vmmov 0   ;;  %vm25_vm1 = vcmask 261120   ;;  %v23_v1 = vld [vmem:[#allocation2] sm:$0xff] }
  0x14   :  { %262 = vmatprep.subr.mxu0 %v338_v0  ;;  %264 = vmatprep.mubr.msk.f32.mxu0 %vm339_vm0, %v338_v0  ;;  %v24_v2 = vld [vmem:[#allocation2 + $0x8] sm:$0xff]  ;;  %s340_s0 = smov 5   ;;  %s341_s20 = smov 127   ;;  %vm180_vm2 = vcmask 49152   ;;  %vm189_vm3 = vcmask 99385   ;;  %vm198_vm4 = vcmask 141418  }
  0x15   :  { %267 = vmatprep.subr.mxu1 %v338_v0  ;;  %269 = vmatprep.mubr.msk.f32.mxu1 %vm339_vm0, %v338_v0  ;;  %s342_s21 = smov 10   ;;  %s343_s22 = smov 14   ;;  %vm207_vm5 = vcmask 175251   ;;  %vm216_vm6 = vcmask 200884   ;;  %vm225_vm7 = vcmask 218317   ;;  %vm234_vm8 = vcmask 227550  }
  0x16   :  { %263 = vmatpush3.xpose.msk.msra.mxu0 %vm25_vm1, %v23_v1  ;;  %268 = vmatpush3.xpose.msk.msra.mxu1 %vm25_vm1, %v24_v2  ;;  %s344_s23 = smov 17   ;;  %s345_s24 = smov 19  }
  0x17   :  { %s346_s25 = smov 20   ;;  %s347_s26 = smov [#allocation5]  }
  0x18   :  { %s242_s27 = sshll.u32 %s347_s26, 4  ;;  %s243_s27 = int_to_ptr.vmem [resolvable:$true] %s242_s27 }
  0x19   :  { %265 = vmatmul.mubr.msk.f32.vlgmr.msra.gmra.mrb[0].mxu0 %vm25_vm1, %v23_v1  ;;  %270 = vmatmul.mubr.msk.f32.vlgmr.msra.gmra.mrb[0].mxu1 %vm25_vm1, %v24_v2  ;;  %s309_s28 = scalar_lea.vmem %s243_s27, 32  ;;  %p314_p9 = scmp.lt.s32.totalorder %s243_s27, %s243_s27 }
  0x1a   :  { %p310_p8 = scmp.ne.s32.totalorder %s243_s27, %s309_s28  ;;  %p315_p10 = scmp.lt.s32.totalorder %s309_s28, %s309_s28 }
  0x1c   :  { %p316_p11 = por %p315_p10, %p314_p9 }
  0x1e   :  { %p317_p12 = pnand %p316_p11, %p310_p8 }
  0xec   :  { %v95_v3 = vpop.f32.mrb[0].mxu0  ;;  %v168_v4 = vpop.f32.mrb[0].mxu1 }
  0xed   :  { %v96_v5 = vadd.f32 1.0, %v95_v3  ;;  %v266_v6 = vpop.f32.mrb[1].mxu0  ;;  %v271_v7 = vpop.f32.mrb[1].mxu1  ;;  %v169_v8 = vadd.f32 1.0, %v168_v4 }
  0xef   :  { %183 = vrot.lane.b32.xlu1 %v96_v5, %s340_s0  ;;  %174 = vrot.lane.b32.xlu0 %v96_v5, %s341_s20 }
  0xf3   :  { %185 = vrot.lane.b32.xlu1 %v169_v8, %s340_s0  ;;  %176 = vrot.lane.b32.xlu0 %v169_v8, %s341_s20 }
  0xf7   :  { %194 = vrot.lane.b32.xlu1 %v169_v8, %s342_s21  ;;  %192 = vrot.lane.b32.xlu0 %v96_v5, %s342_s21 }
  0xfb   :  { %203 = vrot.lane.b32.xlu1 %v169_v8, %s343_s22  ;;  %201 = vrot.lane.b32.xlu0 %v96_v5, %s343_s22 }
  0xff   :  { %212 = vrot.lane.b32.xlu1 %v169_v8, %s344_s23  ;;  %210 = vrot.lane.b32.xlu0 %v96_v5, %s344_s23 }
 0x103   :  { %221 = vrot.lane.b32.xlu1 %v169_v8, %s345_s24  ;;  %219 = vrot.lane.b32.xlu0 %v96_v5, %s345_s24 }
 0x107   :  { %230 = vrot.lane.b32.xlu1 %v169_v8, %s346_s25  ;;  %228 = vrot.lane.b32.xlu0 %v96_v5, %s346_s25 }
 0x161   :  { %v184_v9 = vpop.permute.xlu1 %183  ;;  %v175_v10 = vpop.permute.xlu0 %174 }
 0x162   :  { %181 = vst.msk [vmem:[#allocation5] sm:$0x1] %vm180_vm2, %v175_v10 }
 0x163   :  { %190 = vst.msk [vmem:[#allocation5 - $0x1] sm:$0x2] %vm189_vm3, %v184_v9 }
 0x165   :  { %v186_v11 = vpop.permute.xlu1 %185  ;;  %v177_v12 = vpop.permute.xlu0 %176 }
 0x166   :  { %182 = vst.msk [vmem:[#allocation5 + $0x1] sm:$0x1] %vm180_vm2, %v177_v12 }
 0x167   :  { %191 = vst.msk [vmem:[#allocation5] sm:$0x2] %vm189_vm3, %v186_v11 }
 0x169   :  { %v195_v13 = vpop.permute.xlu1 %194  ;;  %v193_v14 = vpop.permute.xlu0 %192 }
 0x16a   :  { %200 = vst.msk [vmem:[#allocation5 - $0x1] sm:$0x4] %vm198_vm4, %v195_v13  ;;  %199 = vst.msk [vmem:[#allocation5 - $0x2] sm:$0x4] %vm198_vm4, %v193_v14 }
 0x16d   :  { %v204_v15 = vpop.permute.xlu1 %203  ;;  %v202_v16 = vpop.permute.xlu0 %201 }
 0x16e   :  { %209 = vst.msk [vmem:[#allocation5 - $0x2] sm:$0x8] %vm207_vm5, %v204_v15  ;;  %208 = vst.msk [vmem:[#allocation5 - $0x3] sm:$0x8] %vm207_vm5, %v202_v16 }
 0x171   :  { %v213_v17 = vpop.permute.xlu1 %212  ;;  %v211_v18 = vpop.permute.xlu0 %210 }
 0x172   :  { %218 = vst.msk [vmem:[#allocation5 - $0x3] sm:$0x10] %vm216_vm6, %v213_v17  ;;  %217 = vst.msk [vmem:[#allocation5 - $0x4] sm:$0x10] %vm216_vm6, %v211_v18 }
 0x175   :  { %v222_v19 = vpop.permute.xlu1 %221  ;;  %v220_v20 = vpop.permute.xlu0 %219 }
 0x176   :  { %227 = vst.msk [vmem:[#allocation5 - $0x4] sm:$0x20] %vm225_vm7, %v222_v19  ;;  %226 = vst.msk [vmem:[#allocation5 - $0x5] sm:$0x20] %vm225_vm7, %v220_v20 }
 0x179   :  { %v231_v21 = vpop.permute.xlu1 %230  ;;  %v229_v22 = vpop.permute.xlu0 %228 }
 0x17a   :  { %236 = vst.msk [vmem:[#allocation5 - $0x5] sm:$0x40] %vm234_vm8, %v231_v21  ;;  %235 = vst.msk [vmem:[#allocation5 - $0x6] sm:$0x40] %vm234_vm8, %v229_v22 }
 0x17b   :  { %320 = shalt.err (!%p317_p12)
}
 0x17c   :  { %s321_s2 = scalar_lea.hbm %s385_s1, 32 }
 0x17d   :  { %p322_p13 = scmp.ne.s32.totalorder %s385_s1, %s321_s2  ;;  %p325_p0 = scmp.lt.u32.totalorder %s321_s2, %s385_s1 }
 0x17f   :  { %p327_p1 = pnand %p325_p0, %p322_p13 }
 0x181   :  { %330 = shalt.err (!%p327_p1)
}
 0x182   :  { %s348_s7 = smov 16   ;;  %s349_s8 = smov 1  }
 0x183   :  { %248 = dma.vmem_to_hbm [thread:$0]  %s243_s27, 32, %s385_s1, [#allocation4], %s348_s7, %s348_s7, %s349_s8  }
 0x184   :  { %333 = dma.done.wait [#allocation4], 32  }
 0x185   :  { %334 = vsyncadd [#allocation4], 4294967264 }
 0x186   :  { %252 = vsyncpa [#allocation3], 1 }
 0x187   :  { %253 = vsyncpa [#allocation4], 1 }

</bundles_post_ra>
